<compile_context>
chip_gen: v7x
topology: tpu7x:2x2x1
jax: 0.10.0
libtpu: 0.0.40
codegen_flags: <defaults>
</compile_context>

<pallas_src>
import functools

import jax
import jax.numpy as jnp
from jax.experimental import pallas as pl
from jax.experimental.pallas import tpu as pltpu


def _round_up(a, m):
    return ((a + m - 1) // m) * m


def _upsample_kernel(x_ref, w_ref, b_ref, o_ref):
    # x_ref: (q_tile, n_lay*C)  im2col'd tile of the low-rate input
    # w_ref: (n_lay*C, s*C)     fused transposed-conv weight (VMEM-resident)
    # b_ref: (1, s*C)           bias tiled over the s output phases
    # o_ref: (q_tile, s*C)      lane-dense output tile (s samples per frame)
    acc = jnp.dot(x_ref[...], w_ref[...], preferred_element_type=jnp.float32)
    o_ref[...] = (acc + b_ref[...]).astype(o_ref.dtype)


def upsampling(lc, weight, bias, *, stride, filter_sz, q_tile=256,
               compute_dtype=None):
    """ConvTranspose1d(C, C, filter_sz, stride, padding=filter_sz-stride).

    lc:     (B, C, S)  PyTorch NCW layout
    weight: (C_in, C_out, F)  PyTorch ConvTranspose1d weight layout
    bias:   (C_out,)
    returns (B, C_out, T_out) with T_out = (S-1)*stride - 2*padding + F
    """
    B, C_in, S = lc.shape
    ci_w, C_out, F = weight.shape
    assert ci_w == C_in
    s = int(stride)
    p = filter_sz - stride                      # module's fixed padding
    assert p >= 0, "module requires filter_sz >= stride"
    T_out = (S - 1) * s - 2 * p + F

    n_lay = -(-F // s)                          # ceil(F / stride) overlap layers
    Fp = n_lay * s                              # kernel taps zero-padded length

    # Output "stride-frames": frame q holds output positions q*s .. q*s+s-1 of
    # the un-cropped transposed conv; Q0 frames cover everything we keep.
    Q0 = S + n_lay - 1
    qt = min(int(q_tile), _round_up(Q0, 8))
    qt = max(8, _round_up(qt, 8))               # sublane-aligned tile
    n_qt = -(-Q0 // qt)
    Qp = n_qt * qt                              # padded frame count

    dt = compute_dtype or lc.dtype

    # ---- build the im2col LHS: Xcat[b, q, l*C + ci] = x[b, ci, q + l - (n_lay-1)]
    x_t = jnp.transpose(lc, (0, 2, 1)).astype(dt)                  # (B, S, C)
    x_pad = jnp.pad(x_t, ((0, 0), (n_lay - 1, Qp - S), (0, 0)))    # (B, Qp+n_lay-1, C)
    x_cat = x_pad[:, :Qp, :] if n_lay == 1 else jnp.concatenate(
        [x_pad[:, l:l + Qp, :] for l in range(n_lay)], axis=-1)    # (B, Qp, n_lay*C)

    # ---- fused weight: Wbig[l*C+ci, r*C+co] = W[ci, co, (n_lay-1-l)*s + r]
    w = jnp.pad(weight, ((0, 0), (0, 0), (0, Fp - F)))
    w = w.reshape(C_in, C_out, n_lay, s)[:, :, ::-1, :]
    w_big = jnp.transpose(w, (2, 0, 3, 1)).reshape(n_lay * C_in, s * C_out)
    w_big = w_big.astype(dt)
    b_big = jnp.tile(bias, s).reshape(1, s * C_out).astype(jnp.float32)

    out = pl.pallas_call(
        _upsample_kernel,
        out_shape=jax.ShapeDtypeStruct((B, Qp, s * C_out), lc.dtype),
        grid=(B, n_qt),
        in_specs=[
            pl.BlockSpec((None, qt, n_lay * C_in), lambda b, q: (b, q, 0)),
            pl.BlockSpec((n_lay * C_in, s * C_out), lambda b, q: (0, 0)),
            pl.BlockSpec((1, s * C_out), lambda b, q: (0, 0)),
        ],
        out_specs=pl.BlockSpec((None, qt, s * C_out), lambda b, q: (b, q, 0)),
        compiler_params=pltpu.CompilerParams(
            dimension_semantics=("parallel", "parallel")),
    )(x_cat, w_big, b_big)

    # frames -> flat time axis, crop the transposed-conv padding, back to NCW
    y0 = out.reshape(B, Qp * s, C_out)
    y = y0[:, p:p + T_out, :]
    return jnp.transpose(y, (0, 2, 1))


def _reference(lc, weight, bias, stride, padding):
    """Plain-JAX reference following PyTorch ConvTranspose1d exactly."""
    B, C_in, S = lc.shape
    _, C_out, F = weight.shape
    T_full = (S - 1) * stride + F
    y0 = jnp.zeros((B, C_out, T_full), jnp.float32)
    for k in range(F):
        contrib = jnp.einsum("bci,co->boi", lc, weight[:, :, k])
        y0 = y0.at[:, :, k:k + (S - 1) * stride + 1:stride].add(contrib)
    T_out = T_full - 2 * padding
    return y0[:, :, padding:padding + T_out] + bias[None, :, None]


if __name__ == "__main__":
    key = jax.random.PRNGKey(0)

    def run_case(k, *, B, C, S, stride, filter_sz, q_tile):
        k1, k2, k3 = jax.random.split(k, 3)
        lc = jax.random.normal(k1, (B, C, S), jnp.float32)
        bound = 1.0 / ((C * filter_sz) ** 0.5)
        w = jax.random.uniform(k2, (C, C, filter_sz), jnp.float32, -bound, bound)
        b = jax.random.uniform(k3, (C,), jnp.float32, -bound, bound)

        out = upsampling(lc, w, b, stride=stride, filter_sz=filter_sz,
                         q_tile=q_tile)
        out = jax.block_until_ready(out)

        ref = _reference(lc, w, b, stride, filter_sz - stride)
        T_out = (S - 1) * stride - 2 * (filter_sz - stride) + filter_sz
        assert out.shape == (B, C, T_out), out.shape
        err = float(jnp.max(jnp.abs(out - ref)))
        assert jnp.allclose(out, ref, atol=1e-2, rtol=1e-2), err

    ks = jax.random.split(key, 3)
    # canonical WaveNet upsampler: filter_sz = 2 * stride (2 overlap layers)
    run_case(ks[0], B=2, C=4, S=16, stride=4, filter_sz=8, q_tile=256)
    # multi-tile grid + filter_sz not a multiple of stride
    run_case(ks[1], B=2, C=4, S=150, stride=3, filter_sz=5, q_tile=64)
    # no tap overlap (filter_sz == stride, padding == 0)
    run_case(ks[2], B=1, C=8, S=16, stride=2, filter_sz=2, q_tile=256)

    print("KERNEL_OK")
</pallas_src>

<mosaic_0001>
module attributes {stable_mosaic.version = 11 : i64} {
  func.func @_upsample_kernel(%arg0: i32, %arg1: i32, %arg2: memref<1x24x8xf32, #tpu.memory_space<vmem>>, %arg3: memref<8x16xf32, #tpu.memory_space<vmem>>, %arg4: memref<1x16xf32, #tpu.memory_space<vmem>>, %arg5: memref<1x24x16xf32, #tpu.memory_space<vmem>>) attributes {dimension_semantics = [#tpu.dimension_semantics<parallel>, #tpu.dimension_semantics<parallel>], iteration_bounds = array<i64: 2, 1>, scalar_prefetch = 0 : i64, scratch_operands = 0 : i64, tpu.core_type = #tpu.core_type<tc>, window_params = [{transform_indices = @transform_0, window_bounds = array<i64: 1, 24, 8>}, {pipeline_mode = #tpu.pipeline_mode<synchronous>, transform_indices = @transform_1, window_bounds = array<i64: 8, 16>}, {pipeline_mode = #tpu.pipeline_mode<synchronous>, transform_indices = @transform_2, window_bounds = array<i64: 1, 16>}, {transform_indices = @transform_3, window_bounds = array<i64: 1, 24, 16>}]} {
    %c0 = arith.constant 0 : index
    %c0_0 = arith.constant 0 : index
    %c0_1 = arith.constant 0 : index
    %0 = vector.load %arg2[%c0, %c0_0, %c0_1] : memref<1x24x8xf32, #tpu.memory_space<vmem>>, vector<1x24x8xf32>
    %1 = vector.shape_cast %0 : vector<1x24x8xf32> to vector<24x8xf32>
    %c0_2 = arith.constant 0 : index
    %c0_3 = arith.constant 0 : index
    %2 = vector.load %arg3[%c0_2, %c0_3] : memref<8x16xf32, #tpu.memory_space<vmem>>, vector<8x16xf32>
    %cst = arith.constant dense<0.000000e+00> : vector<24x16xf32>
    %3 = tpu.matmul %1, %2, %cst {dimension_numbers = #tpu.dot_dimension_numbers<[1], [0], [0], [1], [0, 0, 1, 1], [], []>} : vector<24x8xf32>, vector<8x16xf32>, vector<24x16xf32> -> vector<24x16xf32>
    %c0_4 = arith.constant 0 : index
    %c0_5 = arith.constant 0 : index
    %4 = vector.load %arg4[%c0_4, %c0_5] : memref<1x16xf32, #tpu.memory_space<vmem>>, vector<1x16xf32>
    %5 = vector.broadcast %4 : vector<1x16xf32> to vector<24x16xf32>
    %6 = arith.addf %3, %5 : vector<24x16xf32>
    %c0_6 = arith.constant 0 : index
    %c0_7 = arith.constant 0 : index
    %c0_8 = arith.constant 0 : index
    %7 = vector.load %arg5[%c0_6, %c0_7, %c0_8] : memref<1x24x16xf32, #tpu.memory_space<vmem>>, vector<1x24x16xf32>
    %8 = vector.shape_cast %7 : vector<1x24x16xf32> to vector<24x16xf32>
    %9 = vector.shape_cast %6 : vector<24x16xf32> to vector<1x24x16xf32>
    tpu.vector_store %arg5[%c0_6, %c0_7, %c0_8], %9 {strides = array<i32>} : memref<1x24x16xf32, #tpu.memory_space<vmem>>, vector<1x24x16xf32>,
    return
  }
  func.func @transform_0(%arg0: i32, %arg1: i32) -> (i32, i32, i32) {
    %c0_i32 = arith.constant 0 : i32
    %c0_i32_0 = arith.constant 0 : i32
    return %arg0, %arg1, %c0_i32 : i32, i32, i32
  }
  func.func @transform_1(%arg0: i32, %arg1: i32) -> (i32, i32) {
    %c0_i32 = arith.constant 0 : i32
    %c0_i32_0 = arith.constant 0 : i32
    %c0_i32_1 = arith.constant 0 : i32
    return %c0_i32, %c0_i32_0 : i32, i32
  }
  func.func @transform_2(%arg0: i32, %arg1: i32) -> (i32, i32) {
    %c0_i32 = arith.constant 0 : i32
    %c0_i32_0 = arith.constant 0 : i32
    %c0_i32_1 = arith.constant 0 : i32
    return %c0_i32, %c0_i32_0 : i32, i32
  }
  func.func @transform_3(%arg0: i32, %arg1: i32) -> (i32, i32, i32) {
    %c0_i32 = arith.constant 0 : i32
    %c0_i32_0 = arith.constant 0 : i32
    return %arg0, %arg1, %c0_i32 : i32, i32, i32
  }
}

</mosaic_0001>

<bundles_post_ra>
// kernel: tpu_custom_call.1
= control target key start
LH: loop header
LB: loop body
LE: loop exit
PB: predicated region body
PF: predicated region fallthrough
CT: control target
= control target key end

     0   :  { %s505_s12 = smov 0   ;;  %s507_s13 = smov 0   ;;  %s544_s0 = inlined_call_operand.vmem [shape: f32[2,24,8], index: 0, kind: input, shape index: {}]   ;;  %s545_s1 = inlined_call_operand.vmem [shape: f32[8,16], index: 1, kind: input, shape index: {}]   ;;  %s546_s2 = inlined_call_operand.vmem [shape: f32[1,16], index: 2, kind: input, shape index: {}]   ;;  %s547_s3 = inlined_call_operand.vmem [shape: f32[2,24,16], index: 3, kind: output, shape index: {}]  }
   0x1   :  { %s509_s14 = smov 0  }
   0x2 LB: > { %s25_s15 = sadd.s32 1, %s477_s13  ;;  %p406_p0 = scmp.ge.s32.totalorder %s481_s14, 1  ;;  %s481_s14 = sphi %s509_s14, %s13_s14   ;;  %s477_s13 = sphi %s507_s13, %s549_s13   ;;  %s473_s12 = sphi %s505_s12, %s548_s12  }
   0x3   : > { %p27_p1 = scmp.ge.s32.totalorder %s25_s15, 2  ;;  %p158_p2 = scmp.lt.s32.totalorder %s481_s14, 3 }
   0x5   : > { %s551_s15 = smov (%p27_p1, %s25_s15), 0  ;;  %p159_p3 = pnand %p406_p0, %p158_p2 }
   0x6   : > { %v213_v0 = vld [vmem:[%s545_s1] sm:$0xff] (!%p159_p3)  ;;  %p191_p4 = scmp.lt.s32.totalorder (!%p159_p3), %s473_s12, 1  ;;  %v483_v1 = vmov (!%p159_p3), 0.0   ;;  %vm484_vm0 = vmmov (!%p159_p3), 0   ;;  %vm221_vm1 = vcmask (!%p159_p3), 64512   ;;  %vm311_vm2 = vcmask (!%p159_p3), 130048  }
   0x7   : > { %162 = sbr.rel (%p159_p3) target bundleno = 238 (0xee), region = 32  ;;  %430 = vmatprep.subr.mxu1 (!%p159_p3), %v483_v1  ;;  %424 = vmatprep.mubr.msk.f32.mxu1 (!%p159_p3), %vm484_vm0, %v483_v1  ;;  %v409_v5 = vld [vmem:[%s546_s2] ss:$0 sm:$0xff] (!%p159_p3) }
   0x8   : > { %431 = vmatpush3.msra.mxu1 (!%p159_p3), %v213_v0  ;;  %419 = vmatprep.subr.mxu0 (!%p159_p3), %v483_v1 }
   0x9   : > { %420 = vmatpush3.msra.mxu0 (!%p159_p3), %v213_v0  ;;  %421 = vmatprep.mubr.msk.f32.mxu0 (!%p159_p3), %vm484_vm0, %v483_v1 }
   0xe   : > { %s553_s12 = smov (!%p191_p4, %s473_s12), 1 }
   0xf   : > { %s432_s18 = smul.u32 24, %s553_s12 }
  0x11   : > { %s198_s21 = scalar_lea.vmem %s544_s0, %s432_s18  ;;  %s208_s26 = scalar_lea.vmem %s547_s3, %s432_s18 }
  0x12   : > { %v211_v2 = vld [vmem:[%s198_s21 + $0x8] sm:$0xff]  ;;  %v210_v3 = vld [vmem:[%s198_s21] sm:$0xff]  ;;  %v212_v4 = vld [vmem:[%s198_s21 + $0x10] sm:$0xff] }
  0x13   : > { %425 = vmatmul.mubr.msk.f32.vlgmr.msra.gmra.mrb[0].mxu1 %vm221_vm1, %v211_v2  ;;  %422 = vmatmul.mubr.msk.f32.vlgmr.msra.gmra.mrb[0].mxu0 %vm221_vm1, %v210_v3 }
  0x14   : > { %427 = vmatprep.mubr.msk.f32.mxu1 %vm484_vm0, %v483_v1 }
  0x17   : > { %428 = vmatmul.mubr.msk.f32.gmra.mrb[2].mxu1 %vm221_vm1, %v212_v4 }
  0xe6   : > { %v302_v6 = vpop.f32.mrb[0].mxu1  ;;  %v297_v7 = vpop.f32.mrb[0].mxu0 }
  0xe7   : > { %v303_v8 = vadd.f32 %v409_v5, %v302_v6  ;;  %v426_v9 = vpop.f32.mrb[1].mxu1  ;;  %v298_v10 = vadd.f32 %v409_v5, %v297_v7  ;;  %v423_v11 = vpop.f32.mrb[1].mxu0 }
  0xe9   : > { %313 = vst.msk [vmem:[%s208_s26 + $0x8] sm:$0xff] %vm311_vm2, %v303_v8  ;;  %312 = vst.msk [vmem:[%s208_s26] sm:$0xff] %vm311_vm2, %v298_v10 }
  0xea   : > { %v307_v12 = vpop.f32.mrb[2].mxu1 }
  0xeb   : > { %v308_v13 = vadd.f32 %v409_v5, %v307_v12  ;;  %v429_v14 = vpop.f32.mrb[3].mxu1 }
  0xed   : > { %314 = vst.msk [vmem:[%s208_s26 + $0x10] sm:$0xff] %vm311_vm2, %v308_v13 }
  0xee PF: > { %s13_s14 = sadd.s32 1, %s481_s14   ;;  %s548_s12 = smov %s477_s13 }
  0xef   : > { %p10_p5 = scmp.ge.s32.totalorder %s13_s14, 4   ;;  %s549_s13 = smov %s551_s15 }
  0xf1   :  { %12 = sbr.rel (!%p10_p5) target bundleno = 2 (0x2), region = 62 }

</bundles_post_ra>
